<compile_context>
chip_gen: v7x
topology: tpu7x:2x2x1
jax: 0.10.0
libtpu: 0.0.40
codegen_flags: <defaults>
</compile_context>

<pallas_src>
import jax
import jax.numpy as jnp
from jax import lax
from jax.experimental import pallas as pl
from jax.experimental.pallas import tpu as pltpu


def _critic_kernel(x_ref, w1_ref, b1_ref, w2_ref, b2_ref, w3_ref, b3_ref, o_ref):
    # x tile arrives batch-major (TB, S).  Contract over S against W1 (H, S) so
    # the activations come out feature-major (H, TB): batch on the lane axis.
    # Mosaic handles the operand orientation in-kernel (hidden behind the DMA).
    h1 = lax.dot_general(
        w1_ref[...], x_ref[...],
        dimension_numbers=(((1,), (1,)), ((), ())),
        preferred_element_type=jnp.float32,
    ) + b1_ref[...]
    h1 = jnp.maximum(h1, 0.0)                                             # (H, TB)

    h2 = jnp.dot(w2_ref[...], h1, preferred_element_type=jnp.float32) + b2_ref[...]
    h2 = jnp.maximum(h2, 0.0)                                             # (H, TB)

    # fc3 output width is 1 -> VPU multiply + sublane (XLU) reduction instead of
    # a 1-wide MXU matmul.
    out = jnp.sum(h2 * w3_ref[...], axis=0, keepdims=True) + b3_ref[...]  # (1, TB)
    o_ref[...] = out.astype(o_ref.dtype)


def _pick_batch_tile(b):
    # Per-grid-step overhead is ~0.35 us while an x tile is only 4*S*TB bytes,
    # so use large tiles.  Cap at 8192 (double-buffered x tile ~2 MiB at S=32,
    # far under the 32 MiB default scoped-VMEM limit and v7x's 64 MiB VMEM).
    # Use ~half the batch (rounded up to a 128-lane multiple) so the grid keeps
    # >= 2 steps when possible and the "parallel" axis still feeds both v7x TCs.
    half = (b + 1) // 2
    tb = ((half + 127) // 128) * 128
    return max(128, min(tb, 8192))


@jax.jit
def critic_forward(x, w1, b1, w2, b2, w3, b3):
    """x: (B, ...) -> value estimate (B, 1). Matches PyTorch Critic.forward."""
    B = x.shape[0]
    H, S = w1.shape  # torch layout: (out_features, in_features)

    # x.view(B, -1); keep batch-major, no transpose / no pad (Pallas masks the
    # ragged last block; every batch column is independent so this is safe).
    x2d = x.reshape(B, -1).astype(jnp.float32)                            # (B, S)

    TB = _pick_batch_tile(B)
    grid = pl.cdiv(B, TB)

    resident = lambda i: (0, 0)  # same block every step -> stays VMEM-resident

    cost = pl.CostEstimate(
        flops=2 * B * (S * H + H * H + H),
        transcendentals=0,
        bytes_accessed=4 * (B * (S + 1) + H * S + H * H + 3 * H + 1),
    )

    out = pl.pallas_call(
        _critic_kernel,
        out_shape=jax.ShapeDtypeStruct((1, B), jnp.float32),
        grid_spec=pltpu.PrefetchScalarGridSpec(
            num_scalar_prefetch=0,
            grid=(grid,),
            in_specs=[
                pl.BlockSpec((TB, S), lambda i: (i, 0)),   # x tile (double-buffered)
                pl.BlockSpec((H, S), resident),            # W1
                pl.BlockSpec((H, 1), resident),            # b1
                pl.BlockSpec((H, H), resident),            # W2
                pl.BlockSpec((H, 1), resident),            # b2
                pl.BlockSpec((H, 1), resident),            # w3 column
                pl.BlockSpec((1, 1), resident),            # b3
            ],
            out_specs=pl.BlockSpec((1, TB), lambda i: (0, i)),
        ),
        compiler_params=pltpu.CompilerParams(
            dimension_semantics=("parallel",),  # v7x: shard batch tiles over 2 TCs
        ),
        cost_estimate=cost,
    )(x2d, w1, b1, w2, b2, w3, b3)

    return out.T                                                          # (B, 1)


def init_critic_params(key, state_size, hidden_size):
    """PyTorch nn.Linear-style init (uniform +/- 1/sqrt(fan_in)).

    Weights stored (out_features, in_features) (torch layout); biases (out, 1).
    fc3's weight is returned as a (hidden, 1) column so the kernel can do a VPU
    reduction instead of a width-1 matmul.
    """
    def linear(k, fan_in, fan_out):
        kw, kb = jax.random.split(k)
        bound = 1.0 / jnp.sqrt(jnp.float32(fan_in))
        w = jax.random.uniform(kw, (fan_out, fan_in), jnp.float32, -bound, bound)
        b = jax.random.uniform(kb, (fan_out, 1), jnp.float32, -bound, bound)
        return w, b

    k1, k2, k3 = jax.random.split(key, 3)
    w1, b1 = linear(k1, state_size, hidden_size)
    w2, b2 = linear(k2, hidden_size, hidden_size)
    w3, b3 = linear(k3, hidden_size, 1)
    return w1, b1, w2, b2, w3.T, b3  # w3 as (hidden, 1); b3 is (1, 1)


def critic_reference(x, w1, b1, w2, b2, w3, b3):
    """Pure-JAX reference (standard batch-major math) for correctness checks."""
    B = x.shape[0]
    h = x.reshape(B, -1).astype(jnp.float32)
    h = jnp.maximum(h @ w1.T + b1.T, 0.0)
    h = jnp.maximum(h @ w2.T + b2.T, 0.0)
    return h @ w3 + b3.T


if __name__ == "__main__":
    # Hyperparameters: observation_type == 'pixel', rows=4, columns=4
    #   -> state_size = rows * columns * 2 = 32, hidden_size = 32.
    rows, columns, hidden_size = 4, 4, 32
    state_size = rows * columns * 2
    batch = 2

    key = jax.random.PRNGKey(0)
    k_params, k_x = jax.random.split(key)
    params = init_critic_params(k_params, state_size, hidden_size)

    # Pixel observation in PyTorch NCHW convention: (B, 2, rows, columns).
    x = jax.random.normal(k_x, (batch, 2, rows, columns), jnp.float32)

    out = jax.block_until_ready(critic_forward(x, *params))
    ref = critic_reference(x, *params)
    assert out.shape == (batch, 1), out.shape
    assert jnp.allclose(out, ref, atol=1e-5, rtol=1e-5), (out, ref)

    # Also exercise the multi-tile + ragged-batch path (B not a tile multiple,
    # grid >= 2, masked last block).
    xb = jax.random.normal(jax.random.PRNGKey(1), (1000, 2, rows, columns), jnp.float32)
    outb = jax.block_until_ready(critic_forward(xb, *params))
    refb = critic_reference(xb, *params)
    assert outb.shape == (1000, 1), outb.shape
    assert jnp.allclose(outb, refb, atol=1e-4, rtol=1e-4)

    print("KERNEL_OK")
</pallas_src>

<mosaic_0001>
module attributes {stable_mosaic.version = 11 : i64} {
  func.func @_critic_kernel(%arg0: i32, %arg1: memref<128x32xf32, #tpu.memory_space<vmem>>, %arg2: memref<32x32xf32, #tpu.memory_space<vmem>>, %arg3: memref<32x1xf32, #tpu.memory_space<vmem>>, %arg4: memref<32x32xf32, #tpu.memory_space<vmem>>, %arg5: memref<32x1xf32, #tpu.memory_space<vmem>>, %arg6: memref<32x1xf32, #tpu.memory_space<vmem>>, %arg7: memref<1x1xf32, #tpu.memory_space<vmem>>, %arg8: memref<1x128xf32, #tpu.memory_space<vmem>>) attributes {dimension_semantics = [#tpu.dimension_semantics<parallel>], iteration_bounds = array<i64: 1>, scalar_prefetch = 0 : i64, scratch_operands = 0 : i64, tpu.core_type = #tpu.core_type<tc>, window_params = [{transform_indices = @transform_0, window_bounds = array<i64: 128, 32>}, {pipeline_mode = #tpu.pipeline_mode<synchronous>, transform_indices = @transform_1, window_bounds = array<i64: 32, 32>}, {pipeline_mode = #tpu.pipeline_mode<synchronous>, transform_indices = @transform_2, window_bounds = array<i64: 32, 1>}, {pipeline_mode = #tpu.pipeline_mode<synchronous>, transform_indices = @transform_3, window_bounds = array<i64: 32, 32>}, {pipeline_mode = #tpu.pipeline_mode<synchronous>, transform_indices = @transform_4, window_bounds = array<i64: 32, 1>}, {pipeline_mode = #tpu.pipeline_mode<synchronous>, transform_indices = @transform_5, window_bounds = array<i64: 32, 1>}, {pipeline_mode = #tpu.pipeline_mode<synchronous>, transform_indices = @transform_6, window_bounds = array<i64: 1, 1>}, {transform_indices = @transform_7, window_bounds = array<i64: 1, 128>}]} {
    %c0 = arith.constant 0 : index
    %c0_0 = arith.constant 0 : index
    %0 = vector.load %arg2[%c0, %c0_0] : memref<32x32xf32, #tpu.memory_space<vmem>>, vector<32x32xf32>
    %c0_1 = arith.constant 0 : index
    %c0_2 = arith.constant 0 : index
    %1 = vector.load %arg1[%c0_1, %c0_2] : memref<128x32xf32, #tpu.memory_space<vmem>>, vector<128x32xf32>
    %cst = arith.constant dense<0.000000e+00> : vector<32x128xf32>
    %2 = tpu.matmul %0, %1, %cst {dimension_numbers = #tpu.dot_dimension_numbers<[1], [1], [0], [0], [0, 0, 1, 0], [], []>} : vector<32x32xf32>, vector<128x32xf32>, vector<32x128xf32> -> vector<32x128xf32>
    %c0_3 = arith.constant 0 : index
    %c0_4 = arith.constant 0 : index
    %3 = vector.load %arg3[%c0_3, %c0_4] : memref<32x1xf32, #tpu.memory_space<vmem>>, vector<32x1xf32>
    %4 = vector.broadcast %3 : vector<32x1xf32> to vector<32x128xf32>
    %5 = arith.addf %2, %4 : vector<32x128xf32>
    %cst_5 = arith.constant 0.000000e+00 : f32
    %6 = vector.broadcast %cst_5 : f32 to vector<32x128xf32>
    %7 = arith.maximumf %5, %6 : vector<32x128xf32>
    %c0_6 = arith.constant 0 : index
    %c0_7 = arith.constant 0 : index
    %8 = vector.load %arg4[%c0_6, %c0_7] : memref<32x32xf32, #tpu.memory_space<vmem>>, vector<32x32xf32>
    %cst_8 = arith.constant dense<0.000000e+00> : vector<32x128xf32>
    %9 = tpu.matmul %8, %7, %cst_8 {dimension_numbers = #tpu.dot_dimension_numbers<[1], [0], [0], [1], [0, 0, 1, 1], [], []>} : vector<32x32xf32>, vector<32x128xf32>, vector<32x128xf32> -> vector<32x128xf32>
    %c0_9 = arith.constant 0 : index
    %c0_10 = arith.constant 0 : index
    %10 = vector.load %arg5[%c0_9, %c0_10] : memref<32x1xf32, #tpu.memory_space<vmem>>, vector<32x1xf32>
    %11 = vector.broadcast %10 : vector<32x1xf32> to vector<32x128xf32>
    %12 = arith.addf %9, %11 : vector<32x128xf32>
    %cst_11 = arith.constant 0.000000e+00 : f32
    %13 = vector.broadcast %cst_11 : f32 to vector<32x128xf32>
    %14 = arith.maximumf %12, %13 : vector<32x128xf32>
    %c0_12 = arith.constant 0 : index
    %c0_13 = arith.constant 0 : index
    %15 = vector.load %arg6[%c0_12, %c0_13] : memref<32x1xf32, #tpu.memory_space<vmem>>, vector<32x1xf32>
    %16 = vector.broadcast %15 : vector<32x1xf32> to vector<32x128xf32>
    %17 = arith.mulf %14, %16 : vector<32x128xf32>
    %cst_14 = arith.constant dense<0.000000e+00> : vector<128xf32>
    %18 = vector.multi_reduction <add>, %17, %cst_14 [0] : vector<32x128xf32> to vector<128xf32>
    %19 = vector.shape_cast %18 : vector<128xf32> to vector<1x128xf32>
    %c0_15 = arith.constant 0 : index
    %c0_16 = arith.constant 0 : index
    %20 = vector.load %arg7[%c0_15, %c0_16] : memref<1x1xf32, #tpu.memory_space<vmem>>, vector<1x1xf32>
    %21 = vector.broadcast %20 : vector<1x1xf32> to vector<1x128xf32>
    %22 = arith.addf %19, %21 : vector<1x128xf32>
    %c0_17 = arith.constant 0 : index
    %c0_18 = arith.constant 0 : index
    %23 = vector.load %arg8[%c0_17, %c0_18] : memref<1x128xf32, #tpu.memory_space<vmem>>, vector<1x128xf32>
    tpu.vector_store %arg8[%c0_17, %c0_18], %22 {strides = array<i32>} : memref<1x128xf32, #tpu.memory_space<vmem>>, vector<1x128xf32>,
    return
  }
  func.func @transform_0(%arg0: i32) -> (i32, i32) {
    %c0_i32 = arith.constant 0 : i32
    %c0_i32_0 = arith.constant 0 : i32
    return %arg0, %c0_i32 : i32, i32
  }
  func.func @transform_1(%arg0: i32) -> (i32, i32) {
    %c0_i32 = arith.constant 0 : i32
    %c0_i32_0 = arith.constant 0 : i32
    %c0_i32_1 = arith.constant 0 : i32
    return %c0_i32, %c0_i32_0 : i32, i32
  }
  func.func @transform_2(%arg0: i32) -> (i32, i32) {
    %c0_i32 = arith.constant 0 : i32
    %c0_i32_0 = arith.constant 0 : i32
    %c0_i32_1 = arith.constant 0 : i32
    return %c0_i32, %c0_i32_0 : i32, i32
  }
  func.func @transform_3(%arg0: i32) -> (i32, i32) {
    %c0_i32 = arith.constant 0 : i32
    %c0_i32_0 = arith.constant 0 : i32
    %c0_i32_1 = arith.constant 0 : i32
    return %c0_i32, %c0_i32_0 : i32, i32
  }
  func.func @transform_4(%arg0: i32) -> (i32, i32) {
    %c0_i32 = arith.constant 0 : i32
    %c0_i32_0 = arith.constant 0 : i32
    %c0_i32_1 = arith.constant 0 : i32
    return %c0_i32, %c0_i32_0 : i32, i32
  }
  func.func @transform_5(%arg0: i32) -> (i32, i32) {
    %c0_i32 = arith.constant 0 : i32
    %c0_i32_0 = arith.constant 0 : i32
    %c0_i32_1 = arith.constant 0 : i32
    return %c0_i32, %c0_i32_0 : i32, i32
  }
  func.func @transform_6(%arg0: i32) -> (i32, i32) {
    %c0_i32 = arith.constant 0 : i32
    %c0_i32_0 = arith.constant 0 : i32
    %c0_i32_1 = arith.constant 0 : i32
    return %c0_i32, %c0_i32_0 : i32, i32
  }
  func.func @transform_7(%arg0: i32) -> (i32, i32) {
    %c0_i32 = arith.constant 0 : i32
    %c0_i32_0 = arith.constant 0 : i32
    return %c0_i32, %arg0 : i32, i32
  }
}

</mosaic_0001>

<bundles_post_ra>
// kernel: critic_forward.1
= control target key start
LH: loop header
LB: loop body
LE: loop exit
PB: predicated region body
PF: predicated region fallthrough
CT: control target
= control target key end

     0   :  { %s814_s0 = inlined_call_operand.vmem [shape: f32[2,32], index: 0, kind: input, shape index: {}]   ;;  %s815_s1 = inlined_call_operand.vmem [shape: f32[32,32], index: 1, kind: input, shape index: {}]   ;;  %s816_s2 = inlined_call_operand.vmem [shape: f32[32,1], index: 2, kind: input, shape index: {}]   ;;  %s817_s3 = inlined_call_operand.vmem [shape: f32[32,32], index: 3, kind: input, shape index: {}]   ;;  %s818_s4 = inlined_call_operand.vmem [shape: f32[32,1], index: 4, kind: input, shape index: {}]   ;;  %s819_s5 = inlined_call_operand.vmem [shape: f32[32,1], index: 5, kind: input, shape index: {}]   ;;  %s820_s6 = inlined_call_operand.<no memory space> [shape: f32[1,1], index: 6, kind: input, shape index: {}]   ;;  %s821_s7 = inlined_call_operand.hbm [shape: f32[1,2], index: 7, kind: output, shape index: {}]  }
   0x1   :  { %v12_v0 = vstv %s820_s6 }
   0x2   :  { %13 = vst [vmem:[#allocation2] sm:$0x1] %v12_v0 }
   0x3   :  { %v33_v1 = vld [vmem:[%s814_s0] sm:$0xff]  ;;  %v34_v2 = vld [vmem:[%s814_s0 + $0x8] sm:$0xff]  ;;  %vm73_vm0 = vcmask 261120   ;;  %v35_v3 = vld [vmem:[%s814_s0 + $0x10] sm:$0xff]  ;;  %v603_v7 = vmov 0  }
   0x4   :  { %v519_v4 = vpack.c.bf16 %v34_v2, %v33_v1  ;;  %vm659_vm1 = vmpackc.low %vm73_vm0, %vm73_vm0  ;;  %v36_v6 = vld [vmem:[%s814_s0 + $0x18] sm:$0xff]  ;;  %577 = vset.pattern.permute.xlu0 %v603_v7  ;;  %578 = vset.pattern.permute.xlu1 %v603_v7  ;;  %v29_v9 = vld [vmem:[%s815_s1] sm:$0xff] }
   0x5   :  { %v525_v8 = vpack.c.bf16 %v36_v6, %v35_v3  ;;  %v37_v10 = vld [vmem:[%s814_s0 + $0x20] sm:$0xff]  ;;  %v38_v11 = vld [vmem:[%s814_s0 + $0x28] sm:$0xff]  ;;  %499 = vmatprep.mubr.msk.f32.mxu0 %vm73_vm0, %v29_v9  ;;  %v51_v13 = vld [vmem:[%s816_s2 + $0x10] sm:$0xff] }
   0x6   :  { %521 = vmatprep.subr.msk.bf16.mxu0 %vm659_vm1, %v519_v4  ;;  %v49_v12 = vld [vmem:[%s816_s2] sm:$0xff]  ;;  %65 = vperm.xlu1 %578, %v51_v13   ;;  %v531_v14 = vpack.c.bf16 %v38_v11, %v37_v10  ;;  %v50_v15 = vld [vmem:[%s816_s2 + $0x8] sm:$0xff]  ;;  %v52_v16 = vld [vmem:[%s816_s2 + $0x18] sm:$0xff] }
   0x7   :  { %524 = vmatpush3.bf16.xpose.msk.msra.mxu0 %vm659_vm1, %v519_v4  ;;  %55 = vperm.xlu0 %577, %v49_v12  }
   0x8   :  { %527 = vmatprep.subr.msk.bf16.mxu0 %vm659_vm1, %v525_v8 }
   0x9   :  { %14 = vsyncpa [#allocation4], 0  ;;  %v227_v17 = vld [vmem:[%s818_s4] sm:$0xff]  ;;  %v39_v18 = vld [vmem:[%s814_s0 + $0x30] sm:$0xff] }
   0xa   :  { %70 = vperm.xlu1 %578, %v52_v16   ;;  %v40_v19 = vld [vmem:[%s814_s0 + $0x38] sm:$0xff]  ;;  %v228_v20 = vld [vmem:[%s818_s4 + $0x8] sm:$0xff]  ;;  %v229_v22 = vld [vmem:[%s818_s4 + $0x10] sm:$0xff] }
   0xb   :  { %60 = vperm.xlu0 %577, %v50_v15   ;;  %v537_v21 = vpack.c.bf16 %v40_v19, %v39_v18  ;;  %v230_v23 = vld [vmem:[%s818_s4 + $0x18] sm:$0xff]  ;;  %v352_v24 = vld [vmem:[%s819_s5] sm:$0xff]  ;;  %v42_v26 = vld [vmem:[%s814_s0 + $0x48] sm:$0xff] }
   0xc   :  { %v41_v25 = vld [vmem:[%s814_s0 + $0x40] sm:$0xff]  ;;  %v353_v27 = vld [vmem:[%s819_s5 + $0x8] sm:$0xff]  ;;  %v354_v29 = vld [vmem:[%s819_s5 + $0x10] sm:$0xff] }
   0xd   :  { %v543_v28 = vpack.c.bf16 %v42_v26, %v41_v25  ;;  %v355_v30 = vld [vmem:[%s819_s5 + $0x18] sm:$0xff]  ;;  %v389_v31 = vld [vmem:[#allocation2] sm:$0x1]  ;;  %v43_v32 = vld [vmem:[%s814_s0 + $0x50] sm:$0xff] }
   0xe   :  { %238 = vperm.xlu1 %578, %v228_v20   ;;  %v44_v33 = vld [vmem:[%s814_s0 + $0x58] sm:$0xff]  ;;  %v45_v35 = vld [vmem:[%s814_s0 + $0x60] sm:$0xff]  ;;  %v46_v36 = vld [vmem:[%s814_s0 + $0x68] sm:$0xff] }
   0xf   :  { %530 = vmatpush3.bf16.xpose.msk.msra.mxu0 %vm659_vm1, %v525_v8  ;;  %233 = vperm.xlu0 %577, %v227_v17   ;;  %v549_v34 = vpack.c.bf16 %v44_v33, %v43_v32  ;;  %v555_v37 = vpack.c.bf16 %v46_v36, %v45_v35  ;;  %v47_v38 = vld [vmem:[%s814_s0 + $0x70] sm:$0xff]  ;;  %v48_v39 = vld [vmem:[%s814_s0 + $0x78] sm:$0xff]  ;;  %v30_v41 = vld [vmem:[%s815_s1 + $0x8] sm:$0xff] }
  0x10   :  { %533 = vmatprep.subr.msk.bf16.mxu0 %vm659_vm1, %v531_v14  ;;  %v561_v40 = vpack.c.bf16 %v48_v39, %v47_v38  ;;  %v31_v42 = vld [vmem:[%s815_s1 + $0x10] sm:$0xff]  ;;  %v32_v43 = vld [vmem:[%s815_s1 + $0x18] sm:$0xff]  ;;  %v223_v44 = vld [vmem:[%s817_s3] sm:$0xff] }
  0x11   :  { %513 = vmatprep.mubr.msk.f32.mxu1 %vm73_vm0, %v223_v44  ;;  %v224_v63 = vld [vmem:[%s817_s3 + $0x8] sm:$0xff]  ;;  %v225_v0 = vld [vmem:[%s817_s3 + $0x10] sm:$0xff]  ;;  %v226_v1 = vld [vmem:[%s817_s3 + $0x18] sm:$0xff]  ;;  %s604_s3 = smov [#allocation3]  }
  0x12   :  { %248 = vperm.xlu1 %578, %v230_v23   ;;  %s407_s19 = sshll.u32 %s604_s3, 4  ;;  %s408_s19 = int_to_ptr.vmem [resolvable:$true] %s407_s19 }
  0x13   :  { %243 = vperm.xlu0 %577, %v229_v22   ;;  %s579_s20 = scalar_lea.vmem %s408_s19, 16  ;;  %s583_s21 = scalar_lea.vmem %s408_s19, 32 }
  0x14   :  { %p580_p0 = scmp.ne.s32.totalorder %s408_s19, %s579_s20  ;;  %p584_p1 = scmp.lt.s32.totalorder %s408_s19, %s408_s19 }
  0x15   :  { %p585_p2 = scmp.lt.s32.totalorder %s583_s21, %s579_s20 }
  0x16   :  { %363 = vperm.xlu1 %578, %v353_v27  }
  0x17   :  { %536 = vmatpush3.bf16.xpose.msk.msra.mxu0 %vm659_vm1, %v531_v14  ;;  %358 = vperm.xlu0 %577, %v352_v24   ;;  %p586_p3 = por %p585_p2, %p584_p1 }
  0x18   :  { %539 = vmatprep.subr.msk.bf16.mxu0 %vm659_vm1, %v537_v21 }
  0x19   :  { %p587_p4 = pnand %p586_p3, %p580_p0 }
  0x1a   :  { %373 = vperm.xlu1 %578, %v355_v30  }
  0x1b   :  { %368 = vperm.xlu0 %577, %v354_v29  }
  0x1f   :  { %542 = vmatpush3.bf16.xpose.msk.msra.mxu0 %vm659_vm1, %v537_v21  ;;  %392 = vperm.xlu0 %577, %v389_v31  }
  0x20   :  { %545 = vmatprep.subr.msk.bf16.mxu0 %vm659_vm1, %v543_v28 }
  0x27   :  { %548 = vmatpush3.bf16.xpose.msk.msra.mxu0 %vm659_vm1, %v543_v28  ;;  %v395_v28 = vlaneseq }
  0x28   :  { %551 = vmatprep.subr.msk.bf16.mxu0 %vm659_vm1, %v549_v34 }
  0x29   :  { %v396_v31 = vshrl.u32 %v395_v28, 7 }
  0x2f   :  { %554 = vmatpush3.bf16.xpose.msk.msra.mxu0 %vm659_vm1, %v549_v34  ;;  %v397_v34 = vsub.s32 0, %v396_v31 }
  0x30   :  { %557 = vmatprep.subr.msk.bf16.mxu0 %vm659_vm1, %v555_v37 }
  0x37   :  { %560 = vmatpush3.bf16.xpose.msk.msra.mxu0 %vm659_vm1, %v555_v37 }
  0x38   :  { %563 = vmatprep.subr.msk.bf16.mxu0 %vm659_vm1, %v561_v40 }
  0x3f   :  { %566 = vmatpush3.bf16.xpose.msk.msra.mxu0 %vm659_vm1, %v561_v40 }
  0x46   :  { %500 = vmatmul.mubr.msk.f32.vlgmr.msra.gmra.mrb[0].mxu0 %vm73_vm0, %v30_v41 }
  0x47   :  { %502 = vmatprep.mubr.msk.f32.mxu0 %vm73_vm0, %v31_v42 }
  0x4a   :  { %503 = vmatmul.mubr.msk.f32.gmra.mrb[2].mxu0 %vm73_vm0, %v32_v43 }
  0x85   :  { %v66_v46 = vpop.permute.xlu1 %65 }
  0x86   :  { %v56_v45 = vpop.permute.xlu0 %55 }
  0x89   :  { %v71_v53 = vpop.permute.xlu1 %70 }
  0x8a   :  { %v61_v47 = vpop.permute.xlu0 %60 }
  0x8d   :  { %v239_v3 = vpop.permute.xlu1 %238 }
  0x8e   :  { %v234_v2 = vpop.permute.xlu0 %233 }
  0x91   :  { %v249_v5 = vpop.permute.xlu1 %248 }
  0x92   :  { %v244_v4 = vpop.permute.xlu0 %243 }
  0x95   :  { %v364_v12 = vpop.permute.xlu1 %363 }
  0x96   :  { %v359_v10 = vpop.permute.xlu0 %358 }
  0x99   :  { %v374_v25 = vpop.permute.xlu1 %373 }
  0x9a   :  { %v369_v23 = vpop.permute.xlu0 %368 }
  0x9e   :  { %v393_v36 = vpop.permute.xlu0 %392 }
  0x9f   :  { %v398_v38 = vrot.slane %v393_v36, %v397_v34 }
 0x119   :  { %v501_v48 = vpop.f32.mrb[0].mxu0 }
 0x11a   :  { %v206_v49 = vadd.f32 %v501_v48, %v61_v47  ;;  %v200_v50 = vpop.f32.mrb[1].mxu0 }
 0x11b   :  { %v201_v51 = vadd.f32 %v200_v50, %v56_v45 }
 0x11c   :  { %v220_v52 = vmax.f32 %v206_v49, 0.0 }
 0x11d   :  { %v219_v54 = vmax.f32 %v201_v51, 0.0  ;;  %v504_v55 = vpop.f32.mrb[2].mxu0 }
 0x11e   :  { %v216_v56 = vadd.f32 %v504_v55, %v71_v53  ;;  %v210_v57 = vpop.f32.mrb[3].mxu0 }
 0x11f   :  { %v211_v58 = vadd.f32 %v210_v57, %v66_v46  ;;  %v567_v59 = vpack.c.bf16 %v220_v52, %v219_v54 }
 0x120   :  { %v222_v60 = vmax.f32 %v216_v56, 0.0 }
 0x121   :  { %v221_v61 = vmax.f32 %v211_v58, 0.0  ;;  %568 = vmatprep.subr.bf16.mxu1 %v567_v59 }
 0x122   :  { %570 = vmatpush3.bf16.msra.mxu1 %v567_v59 }
 0x123   :  { %v571_v62 = vpack.c.bf16 %v222_v60, %v221_v61 }
 0x125   :  { %572 = vmatprep.subr.bf16.mxu1 %v571_v62 }
 0x126   :  { %574 = vmatpush3.bf16.msra.mxu1 %v571_v62 }
 0x129   :  { %514 = vmatmul.mubr.msk.f32.vlgmr.msra.gmra.mrb[0].mxu1 %vm73_vm0, %v224_v63 }
 0x12a   :  { %516 = vmatprep.mubr.msk.f32.mxu1 %vm73_vm0, %v225_v0 }
 0x12d   :  { %517 = vmatmul.mubr.msk.f32.gmra.mrb[2].mxu1 %vm73_vm0, %v226_v1 }
 0x1fc   :  { %v515_v6 = vpop.f32.mrb[0].mxu1 }
 0x1fd   :  { %v335_v7 = vadd.f32 %v515_v6, %v239_v3  ;;  %v329_v8 = vpop.f32.mrb[1].mxu1 }
 0x1fe   :  { %v330_v9 = vadd.f32 %v329_v8, %v234_v2 }
 0x1ff   :  { %v349_v11 = vmax.f32 %v335_v7, 0.0 }
 0x200   :  { %v348_v13 = vmax.f32 %v330_v9, 0.0  ;;  %v518_v14 = vpop.f32.mrb[2].mxu1 }
 0x201   :  { %v377_v15 = vmul.f32 %v364_v12, %v349_v11  ;;  %v345_v16 = vadd.f32 %v518_v14, %v249_v5  ;;  %v339_v17 = vpop.f32.mrb[3].mxu1 }
 0x202   :  { %v376_v18 = vmul.f32 %v359_v10, %v348_v13  ;;  %v340_v19 = vadd.f32 %v339_v17, %v244_v4 }
 0x203   :  { %v351_v21 = vmax.f32 %v345_v16, 0.0 }
 0x204   :  { %v380_v20 = vadd.f32 %v377_v15, %v376_v18  ;;  %v350_v22 = vmax.f32 %v340_v19, 0.0 }
 0x205   :  { %v379_v26 = vmul.f32 %v374_v25, %v351_v21 }
 0x206   :  { %v378_v24 = vmul.f32 %v369_v23, %v350_v22 }
 0x208   :  { %v381_v27 = vadd.f32 %v380_v20, %v378_v24 }
 0x20a   :  { %v382_v29 = vadd.f32 %v381_v27, %v379_v26 }
 0x20c   :  { %v383_v30 = vrot.slane %v382_v29, 4 }
 0x20e   :  { %v384_v32 = vadd.f32 %v383_v30, %v382_v29 }
 0x210   :  { %v385_v33 = vrot.slane %v384_v32, 2 }
 0x212   :  { %v386_v35 = vadd.f32 %v385_v33, %v384_v32 }
 0x214   :  { %v387_v37 = vrot.slane %v386_v35, 1 }
 0x216   :  { %v388_v39 = vadd.f32 %v387_v37, %v386_v35 }
 0x218   :  { %v399_v40 = vadd.f32 %v398_v38, %v388_v39 }
 0x21a   :  { %400 = vst [vmem:[#allocation3] sm:$0x1] %v399_v40 }
 0x21b   :  { %590 = shalt.err (!%p587_p4)
}
 0x21c   :  { %s591_s24 = scalar_lea.hbm %s821_s7, 16 }
 0x21d   :  { %p592_p5 = scmp.ne.s32.totalorder %s821_s7, %s591_s24  ;;  %p595_p6 = scmp.lt.u32.totalorder %s591_s24, %s821_s7 }
 0x21f   :  { %p597_p7 = pnand %p595_p6, %p592_p5 }
 0x221   :  { %600 = shalt.err (!%p597_p7)
}
 0x222   :  { %410 = dma.vmem_to_hbm [thread:$0]  %s408_s19, 16, %s821_s7, [#allocation4]  }
 0x223   :  { %601 = dma.done.wait [#allocation4], 16  }
 0x224   :  { %602 = vsyncadd [#allocation4], 4294967280 }
 0x225   :  { %414 = vsyncpa [#allocation4], 1 }

</bundles_post_ra>
